<compile_context>
chip_gen: v6e
topology: v6e:2x2x1
jax: 0.10.0
libtpu: 0.0.40
codegen_flags: <defaults>
</compile_context>

<pallas_src>
import jax
import jax.numpy as jnp
from jax import lax
from jax.experimental import pallas as pl
from jax.experimental.pallas import tpu as pltpu

EPS = 1e-5  # nn.InstanceNorm2d default


def _images_per_step(n, cin):
    """How many images to fold into one grid step."""
    kind = ""
    try:
        kind = jax.devices()[0].device_kind.lower()
    except Exception:
        pass
    # v7x has 2 TensorCores per chip: keep the parallel grid length >= 2 there.
    # v5e/v6e have a single TC: one big step minimizes per-step overhead.
    min_steps = 2 if ("v7" in kind and n > 1) else 1
    b = -(-n // min_steps)                      # ceil(n / min_steps)
    # Bound the per-step unroll / vreg footprint of the im2col value.
    b_cap = max(1, 16 // max(cin, 1))
    return max(1, min(b, b_cap))


def _make_kernel(*, H, W, K, PAD, CIN, COUT, B, CINB, CINB_PAD, MARGIN):
    """Fused conv + instance-norm + relu for a chunk of B images."""
    HW = H * W
    HWP = HW + 2 * MARGIN

    def kernel(x_ref, w_ref, o_ref, xpad_ref):
        # x_ref:    (B, CIN, HW)            flat-spatial input images
        # w_ref:    (B*COUT, K*K*CINB_PAD)  block-diag im2col weights
        # o_ref:    (B, COUT, HW)           flat-spatial outputs (lane-dense)
        # xpad_ref: (CINB_PAD, HWP)         zero-margined staging buffer

        # ---- Stage the chunk into the zero-margined flat-spatial buffer ----
        # MARGIN is a multiple of 128, so every store below is lane-aligned.
        zeros_margin = jnp.zeros((CINB_PAD, MARGIN), jnp.float32)
        xpad_ref[:, :MARGIN] = zeros_margin
        xpad_ref[:, MARGIN + HW:] = zeros_margin
        if CINB_PAD > CINB:
            # Padded rows feed the matmul; they must be zero (0 * garbage/NaN
            # would poison the accumulator even with zero weight columns).
            xpad_ref[CINB:, MARGIN:MARGIN + HW] = jnp.zeros(
                (CINB_PAD - CINB, HW), jnp.float32)
        for b in range(B):
            xpad_ref[b * CIN:(b + 1) * CIN, MARGIN:MARGIN + HW] = x_ref[b]

        # ---- W-edge masks, hoisted out of the tap loop ----------------------
        # (H-edge taps are handled by the zero margins.)
        col = lax.broadcasted_iota(jnp.int32, (CINB_PAD, HW), 1) % W
        col_mask = {}
        for dw in range(-PAD, PAD + 1):
            if dw < 0:
                col_mask[dw] = col >= -dw
            elif dw > 0:
                col_mask[dw] = col < W - dw

        # ---- im2col patch matrix as a value (no VMEM round trip) ------------
        # Rows ordered (kh, kw, image, cin): one aligned (CINB_PAD, HW) slab
        # read per tap covers all B images at once.
        taps = []
        for kh in range(K):
            for kw in range(K):
                dh, dw = kh - PAD, kw - PAD
                start = MARGIN + dh * W + dw
                xs = xpad_ref[:, start:start + HW]          # (CINB_PAD, HW)
                if dw != 0:
                    xs = jnp.where(col_mask[dw], xs, 0.0)
                taps.append(xs)
        patches = jnp.concatenate(taps, axis=0)             # (K*K*CINB_PAD, HW)

        # ---- Single MXU matmul for the whole chunk ---------------------------
        # Block-diagonal weights keep each image on its own output rows.
        acc = jnp.dot(w_ref[...], patches,
                      preferred_element_type=jnp.float32)    # (B*COUT, HW)

        # ---- Per-image InstanceNorm2d (no affine, biased var) + ReLU ---------
        for b in range(B):
            seg = acc[b * COUT:(b + 1) * COUT, :]            # aligned 8-row slice
            mean = jnp.mean(seg, axis=1, keepdims=True)
            cent = seg - mean
            var = jnp.mean(cent * cent, axis=1, keepdims=True)
            y = jnp.maximum(cent * lax.rsqrt(var + EPS), 0.0)
            o_ref[b] = y.astype(o_ref.dtype)                 # lane-dense (8, 256)

    return kernel


def conv_block_forward(x_nchw, w_oihw, padding=1):
    """ConvBlock forward: NCHW in -> NCHW out (PyTorch convention)."""
    n, cin, h, w_sp = x_nchw.shape
    cout, cin2, k, k2 = w_oihw.shape
    assert cin2 == cin and k2 == k
    assert padding == (k - 1) // 2, "kernel assumes stride=1 'same' convolution"

    hw = h * w_sp
    b_imgs = _images_per_step(n, cin)
    steps = -(-n // b_imgs)
    n_pad = steps * b_imgs

    cinb = b_imgs * cin
    cinb_pad = ((cinb + 7) // 8) * 8
    # Lane-aligned zero margin (>= pad*(W+1)) on each side of the flat axis.
    margin = max(128, ((padding * (w_sp + 1) + 127) // 128) * 128)
    hwp = hw + 2 * margin

    # Free reshape (no transpose): NCHW -> (N, C, H*W); pad batch if needed.
    x_flat = x_nchw.reshape(n, cin, hw).astype(jnp.float32)
    if n_pad != n:
        x_flat = jnp.pad(x_flat, ((0, n_pad - n), (0, 0), (0, 0)))

    # Tiny weight re-layout: block-diagonal over the B images of a chunk.
    # Rows: (image, cout); cols: (kh, kw, image, cin) zero-padded to cinb_pad
    # per tap so the contraction rows match the aligned patch slabs.
    w_k = jnp.transpose(w_oihw, (2, 3, 0, 1)).reshape(k * k, cout, cin)
    w_k = w_k.astype(jnp.float32)
    eye_b = jnp.eye(b_imgs, dtype=jnp.float32)
    w_bd = jnp.einsum('koi,bc->bokci', w_k, eye_b)        # (B, O, KK, B, I)
    w_bd = w_bd.reshape(b_imgs, cout, k * k, cinb)
    w_bd = jnp.pad(w_bd, ((0, 0), (0, 0), (0, 0), (0, cinb_pad - cinb)))
    w_mat = w_bd.reshape(b_imgs * cout, k * k * cinb_pad)

    kernel = _make_kernel(H=h, W=w_sp, K=k, PAD=padding, CIN=cin, COUT=cout,
                          B=b_imgs, CINB=cinb, CINB_PAD=cinb_pad, MARGIN=margin)

    out_flat = pl.pallas_call(
        kernel,
        out_shape=jax.ShapeDtypeStruct((n_pad, cout, hw), jnp.float32),
        grid_spec=pltpu.PrefetchScalarGridSpec(
            num_scalar_prefetch=0,
            grid=(steps,),                   # image chunks; shardable on v7x
            in_specs=[
                pl.BlockSpec((b_imgs, cin, hw), lambda g: (g, 0, 0)),
                pl.BlockSpec((b_imgs * cout, k * k * cinb_pad),
                             lambda g: (0, 0)),
            ],
            out_specs=pl.BlockSpec((b_imgs, cout, hw), lambda g: (g, 0, 0)),
            scratch_shapes=[
                pltpu.VMEM((cinb_pad, hwp), jnp.float32),   # margined staging buf
            ],
        ),
        compiler_params=pltpu.CompilerParams(
            dimension_semantics=("parallel",)),
    )(x_flat, w_mat)

    # Drop batch padding (if any); free reshape back to NCHW.
    return out_flat[:n].reshape(n, cout, h, w_sp)


def reference_forward(x_nchw, w_oihw, padding=1):
    """Plain-JAX reference (conv -> instance norm -> relu), NCHW."""
    y = lax.conv_general_dilated(
        x_nchw.astype(jnp.float32), w_oihw.astype(jnp.float32),
        window_strides=(1, 1),
        padding=((padding, padding), (padding, padding)),
        dimension_numbers=("NCHW", "OIHW", "NCHW"),
        precision=lax.Precision.HIGHEST)
    mean = jnp.mean(y, axis=(2, 3), keepdims=True)
    var = jnp.mean(jnp.square(y - mean), axis=(2, 3), keepdims=True)
    y = (y - mean) * lax.rsqrt(var + EPS)
    return jnp.maximum(y, 0.0)


if __name__ == "__main__":
    # Small shapes consistent with the module: N=2, Cin=4, H=W=16, Cout=8, K=3.
    N, CIN, H, W = 2, 4, 16, 16
    COUT, K = 8, 3

    key = jax.random.PRNGKey(0)
    kx, kw = jax.random.split(key)
    x = jax.random.normal(kx, (N, CIN, H, W), dtype=jnp.float32)
    fan_in = CIN * K * K
    bound = 1.0 / (fan_in ** 0.5)
    weight = jax.random.uniform(kw, (COUT, CIN, K, K), dtype=jnp.float32,
                                minval=-bound, maxval=bound)

    out = conv_block_forward(x, weight, padding=1)
    out = jax.block_until_ready(out)

    ref = reference_forward(x, weight, padding=1)
    assert out.shape == (N, COUT, H, W), out.shape
    assert jnp.allclose(out, ref, atol=1e-3, rtol=1e-3), float(
        jnp.max(jnp.abs(out - ref)))

    print("KERNEL_OK")
</pallas_src>

<mosaic_0001>
module attributes {stable_mosaic.version = 11 : i64} {
  func.func @kernel(%arg0: i32, %arg1: memref<2x4x256xf32, #tpu.memory_space<vmem>>, %arg2: memref<16x72xf32, #tpu.memory_space<vmem>>, %arg3: memref<2x8x256xf32, #tpu.memory_space<vmem>>, %arg4: memref<8x512xf32, #tpu.memory_space<vmem>>) attributes {dimension_semantics = [#tpu.dimension_semantics<parallel>], iteration_bounds = array<i64: 1>, scalar_prefetch = 0 : i64, scratch_operands = 1 : i64, tpu.core_type = #tpu.core_type<tc>, window_params = [{transform_indices = @transform_0, window_bounds = array<i64: 2, 4, 256>}, {pipeline_mode = #tpu.pipeline_mode<synchronous>, transform_indices = @transform_1, window_bounds = array<i64: 16, 72>}, {transform_indices = @transform_2, window_bounds = array<i64: 2, 8, 256>}]} {
    %cst = arith.constant 0.000000e+00 : f32
    %0 = vector.broadcast %cst : f32 to vector<8x128xf32>
    %c0 = arith.constant 0 : index
    %c0_0 = arith.constant 0 : index
    %1 = vector.load %arg4[%c0, %c0_0] : memref<8x512xf32, #tpu.memory_space<vmem>>, vector<8x128xf32>
    tpu.vector_store %arg4[%c0, %c0_0], %0 {strides = array<i32>} : memref<8x512xf32, #tpu.memory_space<vmem>>, vector<8x128xf32>,
    %c0_1 = arith.constant 0 : index
    %c384 = arith.constant 384 : index
    %2 = vector.load %arg4[%c0_1, %c384] : memref<8x512xf32, #tpu.memory_space<vmem>>, vector<8x128xf32>
    tpu.vector_store %arg4[%c0_1, %c384], %0 {strides = array<i32>} : memref<8x512xf32, #tpu.memory_space<vmem>>, vector<8x128xf32>,
    %c0_2 = arith.constant 0 : index
    %c0_3 = arith.constant 0 : index
    %c0_4 = arith.constant 0 : index
    %3 = vector.load %arg1[%c0_2, %c0_3, %c0_4] : memref<2x4x256xf32, #tpu.memory_space<vmem>>, vector<1x4x256xf32>
    %4 = vector.shape_cast %3 : vector<1x4x256xf32> to vector<4x256xf32>
    %c0_5 = arith.constant 0 : index
    %c128 = arith.constant 128 : index
    %5 = vector.load %arg4[%c0_5, %c128] : memref<8x512xf32, #tpu.memory_space<vmem>>, vector<4x256xf32>
    tpu.vector_store %arg4[%c0_5, %c128], %4 {strides = array<i32>} : memref<8x512xf32, #tpu.memory_space<vmem>>, vector<4x256xf32>,
    %c1 = arith.constant 1 : index
    %c0_6 = arith.constant 0 : index
    %c0_7 = arith.constant 0 : index
    %6 = vector.load %arg1[%c1, %c0_6, %c0_7] : memref<2x4x256xf32, #tpu.memory_space<vmem>>, vector<1x4x256xf32>
    %7 = vector.shape_cast %6 : vector<1x4x256xf32> to vector<4x256xf32>
    %c4 = arith.constant 4 : index
    %c128_8 = arith.constant 128 : index
    %8 = vector.load %arg4[%c4, %c128_8] : memref<8x512xf32, #tpu.memory_space<vmem>>, vector<4x256xf32>
    tpu.vector_store %arg4[%c4, %c128_8], %7 {strides = array<i32>} : memref<8x512xf32, #tpu.memory_space<vmem>>, vector<4x256xf32>,
    %9 = tpu.iota {dimensions = array<i32: 1>} : vector<8x256xi32>
    %c16_i32 = arith.constant 16 : i32
    %c0_i32 = arith.constant 0 : i32
    %10 = arith.cmpi eq, %c16_i32, %c0_i32 : i32
    %c1_i32 = arith.constant 1 : i32
    %11 = arith.select %10, %c1_i32, %c16_i32 : i32
    %12 = vector.broadcast %11 : i32 to vector<8x256xi32>
    %13 = arith.remsi %9, %12 : vector<8x256xi32>
    %c0_i32_9 = arith.constant 0 : i32
    %14 = vector.broadcast %c0_i32_9 : i32 to vector<8x256xi32>
    %15 = arith.cmpi ne, %13, %14 : vector<8x256xi32>
    %c0_i32_10 = arith.constant 0 : i32
    %16 = vector.broadcast %c0_i32_10 : i32 to vector<8x256xi32>
    %17 = arith.cmpi slt, %13, %16 : vector<8x256xi32>
    %c0_i32_11 = arith.constant 0 : i32
    %18 = arith.cmpi slt, %11, %c0_i32_11 : i32
    %19 = vector.broadcast %18 : i1 to vector<8x256xi1>
    %20 = vector.broadcast %19 : vector<8x256xi1> to vector<8x256xi1>
    %21 = arith.xori %17, %20 : vector<8x256xi1>
    %22 = arith.andi %21, %15 : vector<8x256xi1>
    %23 = vector.broadcast %11 : i32 to vector<8x256xi32>
    %24 = arith.addi %13, %23 : vector<8x256xi32>
    %25 = arith.select %22, %24, %13 : vector<8x256xi1>, vector<8x256xi32>
    %c1_i32_12 = arith.constant 1 : i32
    %26 = vector.broadcast %c1_i32_12 : i32 to vector<8x256xi32>
    %27 = arith.cmpi sge, %25, %26 : vector<8x256xi32>
    %c15_i32 = arith.constant 15 : i32
    %28 = vector.broadcast %c15_i32 : i32 to vector<8x256xi32>
    %29 = arith.cmpi slt, %25, %28 : vector<8x256xi32>
    %c0_13 = arith.constant 0 : index
    %c111 = arith.constant 111 : index
    %30 = vector.load %arg4[%c0_13, %c111] : memref<8x512xf32, #tpu.memory_space<vmem>>, vector<8x256xf32>
    %cst_14 = arith.constant 0.000000e+00 : f32
    %31 = vector.broadcast %cst_14 : f32 to vector<8x256xf32>
    %32 = arith.select %27, %30, %31 : vector<8x256xi1>, vector<8x256xf32>
    %c0_15 = arith.constant 0 : index
    %c112 = arith.constant 112 : index
    %33 = vector.load %arg4[%c0_15, %c112] : memref<8x512xf32, #tpu.memory_space<vmem>>, vector<8x256xf32>
    %c0_16 = arith.constant 0 : index
    %c113 = arith.constant 113 : index
    %34 = vector.load %arg4[%c0_16, %c113] : memref<8x512xf32, #tpu.memory_space<vmem>>, vector<8x256xf32>
    %cst_17 = arith.constant 0.000000e+00 : f32
    %35 = vector.broadcast %cst_17 : f32 to vector<8x256xf32>
    %36 = arith.select %29, %34, %35 : vector<8x256xi1>, vector<8x256xf32>
    %c0_18 = arith.constant 0 : index
    %c127 = arith.constant 127 : index
    %37 = vector.load %arg4[%c0_18, %c127] : memref<8x512xf32, #tpu.memory_space<vmem>>, vector<8x256xf32>
    %cst_19 = arith.constant 0.000000e+00 : f32
    %38 = vector.broadcast %cst_19 : f32 to vector<8x256xf32>
    %39 = arith.select %27, %37, %38 : vector<8x256xi1>, vector<8x256xf32>
    %c0_20 = arith.constant 0 : index
    %c128_21 = arith.constant 128 : index
    %40 = vector.load %arg4[%c0_20, %c128_21] : memref<8x512xf32, #tpu.memory_space<vmem>>, vector<8x256xf32>
    %c0_22 = arith.constant 0 : index
    %c129 = arith.constant 129 : index
    %41 = vector.load %arg4[%c0_22, %c129] : memref<8x512xf32, #tpu.memory_space<vmem>>, vector<8x256xf32>
    %cst_23 = arith.constant 0.000000e+00 : f32
    %42 = vector.broadcast %cst_23 : f32 to vector<8x256xf32>
    %43 = arith.select %29, %41, %42 : vector<8x256xi1>, vector<8x256xf32>
    %c0_24 = arith.constant 0 : index
    %c143 = arith.constant 143 : index
    %44 = vector.load %arg4[%c0_24, %c143] : memref<8x512xf32, #tpu.memory_space<vmem>>, vector<8x256xf32>
    %cst_25 = arith.constant 0.000000e+00 : f32
    %45 = vector.broadcast %cst_25 : f32 to vector<8x256xf32>
    %46 = arith.select %27, %44, %45 : vector<8x256xi1>, vector<8x256xf32>
    %c0_26 = arith.constant 0 : index
    %c144 = arith.constant 144 : index
    %47 = vector.load %arg4[%c0_26, %c144] : memref<8x512xf32, #tpu.memory_space<vmem>>, vector<8x256xf32>
    %c0_27 = arith.constant 0 : index
    %c145 = arith.constant 145 : index
    %48 = vector.load %arg4[%c0_27, %c145] : memref<8x512xf32, #tpu.memory_space<vmem>>, vector<8x256xf32>
    %cst_28 = arith.constant 0.000000e+00 : f32
    %49 = vector.broadcast %cst_28 : f32 to vector<8x256xf32>
    %50 = arith.select %29, %48, %49 : vector<8x256xi1>, vector<8x256xf32>
    %51 = tpu.concatenate %32, %33, %36, %39, %40, %43, %46, %47, %50 in 0 : vector<8x256xf32>, vector<8x256xf32>, vector<8x256xf32>, vector<8x256xf32>, vector<8x256xf32>, vector<8x256xf32>, vector<8x256xf32>, vector<8x256xf32>, vector<8x256xf32> -> vector<72x256xf32>
    %c0_29 = arith.constant 0 : index
    %c0_30 = arith.constant 0 : index
    %52 = vector.load %arg2[%c0_29, %c0_30] : memref<16x72xf32, #tpu.memory_space<vmem>>, vector<16x72xf32>
    %cst_31 = arith.constant dense<0.000000e+00> : vector<16x256xf32>
    %53 = tpu.matmul %52, %51, %cst_31 {dimension_numbers = #tpu.dot_dimension_numbers<[1], [0], [0], [1], [0, 0, 1, 1], [], []>} : vector<16x72xf32>, vector<72x256xf32>, vector<16x256xf32> -> vector<16x256xf32>
    %54 = vector.extract_strided_slice %53 {offsets = [0, 0], sizes = [8, 256], strides = [1, 1]} : vector<16x256xf32> to vector<8x256xf32>
    %cst_32 = arith.constant dense<0.000000e+00> : vector<8xf32>
    %55 = vector.multi_reduction <add>, %54, %cst_32 [1] : vector<8x256xf32> to vector<8xf32>
    %56 = vector.shape_cast %55 : vector<8xf32> to vector<8x1xf32>
    %cst_33 = arith.constant 2.560000e+02 : f32
    %57 = vector.broadcast %cst_33 : f32 to vector<8x1xf32>
    %58 = arith.divf %56, %57 : vector<8x1xf32>
    %59 = vector.broadcast %58 : vector<8x1xf32> to vector<8x256xf32>
    %60 = arith.subf %54, %59 : vector<8x256xf32>
    %61 = arith.mulf %60, %60 : vector<8x256xf32>
    %cst_34 = arith.constant dense<0.000000e+00> : vector<8xf32>
    %62 = vector.multi_reduction <add>, %61, %cst_34 [1] : vector<8x256xf32> to vector<8xf32>
    %63 = vector.shape_cast %62 : vector<8xf32> to vector<8x1xf32>
    %cst_35 = arith.constant 2.560000e+02 : f32
    %64 = vector.broadcast %cst_35 : f32 to vector<8x1xf32>
    %65 = arith.divf %63, %64 : vector<8x1xf32>
    %cst_36 = arith.constant 9.99999974E-6 : f32
    %66 = vector.broadcast %cst_36 : f32 to vector<8x1xf32>
    %67 = arith.addf %65, %66 : vector<8x1xf32>
    %68 = math.rsqrt %67 : vector<8x1xf32>
    %69 = vector.broadcast %68 : vector<8x1xf32> to vector<8x256xf32>
    %70 = arith.mulf %60, %69 : vector<8x256xf32>
    %cst_37 = arith.constant 0.000000e+00 : f32
    %71 = vector.broadcast %cst_37 : f32 to vector<8x256xf32>
    %72 = arith.maximumf %70, %71 : vector<8x256xf32>
    %c0_38 = arith.constant 0 : index
    %c0_39 = arith.constant 0 : index
    %c0_40 = arith.constant 0 : index
    %73 = vector.load %arg3[%c0_38, %c0_39, %c0_40] : memref<2x8x256xf32, #tpu.memory_space<vmem>>, vector<1x8x256xf32>
    %74 = vector.shape_cast %73 : vector<1x8x256xf32> to vector<8x256xf32>
    %75 = vector.shape_cast %72 : vector<8x256xf32> to vector<1x8x256xf32>
    tpu.vector_store %arg3[%c0_38, %c0_39, %c0_40], %75 {strides = array<i32>} : memref<2x8x256xf32, #tpu.memory_space<vmem>>, vector<1x8x256xf32>,
    %76 = vector.extract_strided_slice %53 {offsets = [8, 0], sizes = [8, 256], strides = [1, 1]} : vector<16x256xf32> to vector<8x256xf32>
    %cst_41 = arith.constant dense<0.000000e+00> : vector<8xf32>
    %77 = vector.multi_reduction <add>, %76, %cst_41 [1] : vector<8x256xf32> to vector<8xf32>
    %78 = vector.shape_cast %77 : vector<8xf32> to vector<8x1xf32>
    %cst_42 = arith.constant 2.560000e+02 : f32
    %79 = vector.broadcast %cst_42 : f32 to vector<8x1xf32>
    %80 = arith.divf %78, %79 : vector<8x1xf32>
    %81 = vector.broadcast %80 : vector<8x1xf32> to vector<8x256xf32>
    %82 = arith.subf %76, %81 : vector<8x256xf32>
    %83 = arith.mulf %82, %82 : vector<8x256xf32>
    %cst_43 = arith.constant dense<0.000000e+00> : vector<8xf32>
    %84 = vector.multi_reduction <add>, %83, %cst_43 [1] : vector<8x256xf32> to vector<8xf32>
    %85 = vector.shape_cast %84 : vector<8xf32> to vector<8x1xf32>
    %cst_44 = arith.constant 2.560000e+02 : f32
    %86 = vector.broadcast %cst_44 : f32 to vector<8x1xf32>
    %87 = arith.divf %85, %86 : vector<8x1xf32>
    %cst_45 = arith.constant 9.99999974E-6 : f32
    %88 = vector.broadcast %cst_45 : f32 to vector<8x1xf32>
    %89 = arith.addf %87, %88 : vector<8x1xf32>
    %90 = math.rsqrt %89 : vector<8x1xf32>
    %91 = vector.broadcast %90 : vector<8x1xf32> to vector<8x256xf32>
    %92 = arith.mulf %82, %91 : vector<8x256xf32>
    %cst_46 = arith.constant 0.000000e+00 : f32
    %93 = vector.broadcast %cst_46 : f32 to vector<8x256xf32>
    %94 = arith.maximumf %92, %93 : vector<8x256xf32>
    %c1_47 = arith.constant 1 : index
    %c0_48 = arith.constant 0 : index
    %c0_49 = arith.constant 0 : index
    %95 = vector.load %arg3[%c1_47, %c0_48, %c0_49] : memref<2x8x256xf32, #tpu.memory_space<vmem>>, vector<1x8x256xf32>
    %96 = vector.shape_cast %95 : vector<1x8x256xf32> to vector<8x256xf32>
    %97 = vector.shape_cast %94 : vector<8x256xf32> to vector<1x8x256xf32>
    tpu.vector_store %arg3[%c1_47, %c0_48, %c0_49], %97 {strides = array<i32>} : memref<2x8x256xf32, #tpu.memory_space<vmem>>, vector<1x8x256xf32>,
    return
  }
  func.func @transform_0(%arg0: i32) -> (i32, i32, i32) {
    %c0_i32 = arith.constant 0 : i32
    %c0_i32_0 = arith.constant 0 : i32
    %c0_i32_1 = arith.constant 0 : i32
    return %arg0, %c0_i32, %c0_i32_0 : i32, i32, i32
  }
  func.func @transform_1(%arg0: i32) -> (i32, i32) {
    %c0_i32 = arith.constant 0 : i32
    %c0_i32_0 = arith.constant 0 : i32
    %c0_i32_1 = arith.constant 0 : i32
    return %c0_i32, %c0_i32_0 : i32, i32
  }
  func.func @transform_2(%arg0: i32) -> (i32, i32, i32) {
    %c0_i32 = arith.constant 0 : i32
    %c0_i32_0 = arith.constant 0 : i32
    %c0_i32_1 = arith.constant 0 : i32
    return %arg0, %c0_i32, %c0_i32_0 : i32, i32, i32
  }
}

</mosaic_0001>

<bundles_post_ra>
// kernel: tpu_custom_call.1
= control target key start
LH: loop header
LB: loop body
LE: loop exit
PB: predicated region body
PF: predicated region fallthrough
CT: control target
= control target key end

     0   :  { %7 = vsyncpa [#allocation4], 0  ;;  %s594_s0 = inlined_call_operand.hbm [shape: f32[2,4,256], index: 0, kind: input, shape index: {}]   ;;  %s595_s1 = inlined_call_operand.hbm [shape: f32[16,72], index: 1, kind: input, shape index: {}]   ;;  %s596_s2 = inlined_call_operand.hbm [shape: f32[2,8,256], index: 2, kind: output, shape index: {}]  }
   0x1   :  { %8 = vsyncpa [#allocation7], 0 }
   0x2   :  { %9 = vsyncpa [#allocation5], 0  ;;  %s463_s9 = smov [#allocation3]  }
   0x3   :  { %s15_s10 = sshll.u32 %s463_s9, 4  ;;  %s16_s10 = int_to_ptr.vmem [resolvable:$true] %s15_s10 }
   0x4   :  { %s405_s11 = scalar_lea.vmem %s16_s10, 256  ;;  %p410_p1 = scmp.lt.s32.totalorder %s16_s10, %s16_s10 }
   0x5   :  { %p406_p0 = scmp.ne.s32.totalorder %s16_s10, %s405_s11  ;;  %p411_p2 = scmp.lt.s32.totalorder %s405_s11, %s405_s11 }
   0x7   :  { %p412_p3 = por %p411_p2, %p410_p1 }
   0x9   :  { %p413_p4 = pnand %p412_p3, %p406_p0 }
   0xb   :  { %416 = shalt.err (!%p413_p4)
}
   0xc   :  { %s464_s12 = smov 128   ;;  %s465_s13 = smov 8  }
   0xd   :  { %21 = dma.hbm_to_vmem [thread:$0]  %s594_s0, 256, %s16_s10, [#allocation4], %s464_s12, %s464_s12, %s465_s13  }
   0xe   :  { %s466_s16 = smov [#allocation6]  }
   0xf   :  { %s27_s17 = sshll.u32 %s466_s16, 4  ;;  %s28_s17 = int_to_ptr.vmem [resolvable:$true] %s27_s17 }
  0x10   :  { %s425_s18 = scalar_lea.vmem %s28_s17, 256  ;;  %p430_p6 = scmp.lt.s32.totalorder %s28_s17, %s28_s17 }
  0x11   :  { %p426_p5 = scmp.ne.s32.totalorder %s28_s17, %s425_s18  ;;  %p431_p7 = scmp.lt.s32.totalorder %s425_s18, %s425_s18 }
  0x13   :  { %p432_p8 = por %p431_p7, %p430_p6 }
  0x15   :  { %p433_p9 = pnand %p432_p8, %p426_p5 }
  0x17   :  { %436 = shalt.err (!%p433_p9)
}
  0x18   :  { %33 = dma.hbm_to_vmem [thread:$0]  %s595_s1, 256, %s28_s17, [#allocation7], %s464_s12, %s464_s12, %s465_s13  }
  0x19   :  { %457 = dma.done.wait [#allocation4], 256  }
  0x1a   :  { %458 = vsyncadd [#allocation4], 4294967040 }
  0x1b   :  { %459 = dma.done.wait [#allocation7], 256  }
  0x1c   :  { %460 = vsyncadd [#allocation7], 4294967040  ;;  %v467_v0 = vmov 0.0   ;;  %s468_s0 = smov 111   ;;  %s469_s21 = smov 113   ;;  %v42_v1 = vld [vmem:[#allocation3] sm:$0xff]  ;;  %v55_v7 = vlaneseq }
  0x1d   :  { %167 = vrot.lane.b32.xlu0 %v467_v0, %s468_s0  ;;  %154 = vrot.lane.b32.xlu1 %v467_v0, %s469_s21  ;;  %s470_s22 = smov 112   ;;  %v49_v2 = vld [vmem:[#allocation3 + $0x8] sm:$0xff]  ;;  %46 = vst [vmem:[#allocation2 + $0x10] sm:$0xf] %v42_v1  ;;  %v44_v4 = vcombine.high %v42_v1, %v42_v1  ;;  %s471_s1 = smov 127   ;;  %vm169_vm0 = vcmask 908288  }
  0x1e   :  { %271 = vmatprep.mubr.f32.mxu0 %v467_v0  ;;  %277 = vmatprep.mubr.f32.mxu1 %v467_v0  ;;  %v51_v3 = vcombine.low %v49_v2, %v49_v2  ;;  %54 = vst [vmem:[#allocation2 + $0x18] sm:$0xf0] %v49_v2  ;;  %s472_s23 = smov 1   ;;  %s473_s24 = smov 15   ;;  %v56_v8 = vand.u32 127, %v55_v7  ;;  %vm193_vm3 = vcmask 916480  }
  0x1f   :  { %47 = vst [vmem:[#allocation2 + $0x18] sm:$0xf] %v44_v4  ;;  %s474_s25 = smov 16   ;;  %s475_s26 = smov 17   ;;  %vm156_vm4 = vcmask 924672   ;;  %vm143_vm7 = vcmask 1039360  }
  0x20   :  { %53 = vst [vmem:[#allocation2 + $0x10] sm:$0xf0] %v51_v3  ;;  %v57_v10 = vadd.s32 128, %v56_v8  ;;  %v62_v14 = vand.u32 15, %v56_v8  ;;  %vm124_vm8 = vcmask 7168   ;;  %vm111_vm9 = vcmask 121856  }
  0x21   :  { %191 = vrot.lane.b32.xlu0 %v467_v0, %s470_s22  ;;  %vm182_vm10 = vcmask 130048   ;;  %vm98_vm11 = vcmask 138240   ;;  %v198_v55 = vld [vmem:[#allocation6] sm:$0xff]  ;;  %vm200_vm12 = vcmask 588800   ;;  %v199_v56 = vld [vmem:[#allocation6 + $0x8] sm:$0xff]  ;;  %s476_s27 = smov [#allocation8]  }
  0x22   :  { %v69_v13 = vand.u32 15, %v57_v10  ;;  %vm526_vm2 = vcmp.lt.s32.totalorder %v62_v14, 15  ;;  %vm542_vm6 = vcmp.ge.s32.totalorder %v62_v14, 1  ;;  %s331_s28 = sshll.u32 %s476_s27, 4  ;;  %s332_s28 = int_to_ptr.vmem [resolvable:$true] %s331_s28 }
  0x23   :  { %s437_s29 = scalar_lea.vmem %s332_s28, 512  ;;  %p442_p11 = scmp.lt.s32.totalorder %s332_s28, %s332_s28 }
  0x24   :  { %vm522_vm1 = vcmp.lt.s32.totalorder %v69_v13, 15  ;;  %vm538_vm5 = vcmp.ge.s32.totalorder %v69_v13, 1  ;;  %p438_p10 = scmp.ne.s32.totalorder %s332_s28, %s437_s29  ;;  %p443_p12 = scmp.lt.s32.totalorder %s437_s29, %s437_s29 }
  0x26   :  { %v501_v6 = vld [vmem:[#allocation2 + $0x18] sm:$0xff]  ;;  %p444_p13 = por %p443_p12, %p442_p11 }
  0x27   :  { %v499_v5 = vld [vmem:[#allocation2 + $0x10] sm:$0xff]  ;;  %165 = vrot.lane.b32.xlu0 %v501_v6, %s468_s0 }
  0x28   :  { %163 = vrot.lane.b32.xlu1 %v499_v5, %s468_s0  ;;  %p445_p0 = pnand %p444_p13, %p438_p10 }
  0x2b   :  { %152 = vrot.lane.b32.xlu0 %v501_v6, %s469_s21 }
  0x2c   :  { %189 = vrot.lane.b32.xlu1 %v501_v6, %s470_s22 }
  0x2f   :  { %150 = vrot.lane.b32.xlu0 %v499_v5, %s469_s21 }
  0x30   :  { %187 = vrot.lane.b32.xlu1 %v499_v5, %s470_s22 }
  0x33   :  { %141 = vrot.lane.b32.xlu0 %v467_v0, %s471_s1 }
  0x34   :  { %139 = vrot.lane.b32.xlu1 %v501_v6, %s471_s1 }
  0x37   :  { %120 = vrot.lane.b32.xlu0 %v499_v5, %s472_s23 }
  0x38   :  { %137 = vrot.lane.b32.xlu1 %v499_v5, %s471_s1 }
  0x3b   :  { %118 = vrot.lane.b32.xlu0 %v467_v0, %s472_s23 }
  0x3c   :  { %122 = vrot.lane.b32.xlu1 %v501_v6, %s472_s23 }
  0x3f   :  { %109 = vrot.lane.b32.xlu0 %v501_v6, %s473_s24 }
  0x40   :  { %107 = vrot.lane.b32.xlu1 %v499_v5, %s473_s24 }
  0x43   :  { %178 = vrot.lane.b32.xlu0 %v499_v5, %s474_s25 }
  0x44   :  { %105 = vrot.lane.b32.xlu1 %v467_v0, %s473_s24 }
  0x47   :  { %176 = vrot.lane.b32.xlu0 %v467_v0, %s474_s25 }
  0x48   :  { %180 = vrot.lane.b32.xlu1 %v501_v6, %s474_s25 }
  0x4b   :  { %96 = vrot.lane.b32.xlu0 %v501_v6, %s475_s26 }
  0x4c   :  { %94 = vrot.lane.b32.xlu1 %v499_v5, %s475_s26 }
  0x50   :  { %92 = vrot.lane.b32.xlu1 %v467_v0, %s475_s26 }
  0x8f   :  { %v168_v9 = vpop.permute.xlu0 %167  ;;  %v155_v11 = vpop.permute.xlu1 %154 }
  0x93   :  { %v192_v12 = vpop.permute.xlu0 %191 }
  0x99   :  { %v166_v17 = vpop.permute.xlu0 %165 }
  0x9a   :  { %v164_v16 = vpop.permute.xlu1 %163  ;;  %v171_v19 = vsel %vm169_vm0, %v166_v17, %v168_v9 }
  0x9b   :  { %v170_v20 = vsel %vm169_vm0, %v164_v16, %v166_v17  ;;  %344 = vmatprep.subr.msk.mxu0 %vm522_vm1, %v171_v19  ;;  %358 = vmatprep.subr.msk.mxu1 %vm522_vm1, %v171_v19 }
  0x9c   :  { %345 = vmatpush1.msk.msra.mxu0 %vm526_vm2, %v170_v20  ;;  %367 = vmatpush1.msk.msra.mxu1 %vm526_vm2, %v170_v20 }
  0x9d   :  { %v153_v22 = vpop.permute.xlu0 %152 }
  0x9e   :  { %v190_v21 = vpop.permute.xlu1 %189  ;;  %v158_v29 = vsel %vm156_vm4, %v153_v22, %v155_v11 }
  0x9f   :  { %v195_v23 = vsel %vm193_vm3, %v190_v21, %v192_v12 }
  0xa0   :  { %223 = vmatprep.subr.mxu0 %v195_v23  ;;  %359 = vmatprep.subr.mxu1 %v195_v23 }
  0xa1   :  { %v151_v25 = vpop.permute.xlu0 %150 }
  0xa2   :  { %v188_v24 = vpop.permute.xlu1 %187  ;;  %v157_v30 = vsel %vm156_vm4, %v151_v25, %v153_v22 }
  0xa3   :  { %v194_v27 = vsel %vm193_vm3, %v188_v24, %v190_v21 }
  0xa4   :  { %224 = vmatpush1.msra.mxu0 %v194_v27  ;;  %368 = vmatpush1.msra.mxu1 %v194_v27 }
  0xa5   :  { %346 = vmatprep.subr.msk.mxu0 %vm538_vm5, %v158_v29  ;;  %360 = vmatprep.subr.msk.mxu1 %vm538_vm5, %v158_v29  ;;  %v142_v32 = vpop.permute.xlu0 %141 }
  0xa6   :  { %v140_v31 = vpop.permute.xlu1 %139  ;;  %347 = vmatpush1.msk.msra.mxu0 %vm542_vm6, %v157_v30  ;;  %369 = vmatpush1.msk.msra.mxu1 %vm542_vm6, %v157_v30 }
  0xa7   :  { %v145_v33 = vsel %vm143_vm7, %v140_v31, %v142_v32 }
  0xa8   :  { %348 = vmatprep.subr.msk.mxu0 %vm522_vm1, %v145_v33  ;;  %361 = vmatprep.subr.msk.mxu1 %vm522_vm1, %v145_v33 }
  0xa9   :  { %v121_v35 = vpop.permute.xlu0 %120 }
  0xaa   :  { %v138_v34 = vpop.permute.xlu1 %137 }
  0xab   :  { %v144_v36 = vsel %vm143_vm7, %v138_v34, %v140_v31 }
  0xac   :  { %349 = vmatpush1.msk.msra.mxu0 %vm526_vm2, %v144_v36  ;;  %370 = vmatpush1.msk.msra.mxu1 %vm526_vm2, %v144_v36 }
  0xad   :  { %229 = vmatprep.subr.mxu0 %v501_v6  ;;  %362 = vmatprep.subr.mxu1 %v501_v6  ;;  %v119_v38 = vpop.permute.xlu0 %118 }
  0xae   :  { %v123_v37 = vpop.permute.xlu1 %122  ;;  %230 = vmatpush1.msra.mxu0 %v499_v5  ;;  %371 = vmatpush1.msra.mxu1 %v499_v5  ;;  %v125_v40 = vsel %vm124_vm8, %v119_v38, %v121_v35 }
  0xaf   :  { %v126_v39 = vsel %vm124_vm8, %v121_v35, %v123_v37 }
  0xb0   :  { %350 = vmatprep.subr.msk.mxu0 %vm538_vm5, %v126_v39  ;;  %363 = vmatprep.subr.msk.mxu1 %vm538_vm5, %v126_v39 }
  0xb1   :  { %351 = vmatpush1.msk.msra.mxu0 %vm542_vm6, %v125_v40  ;;  %372 = vmatpush1.msk.msra.mxu1 %vm542_vm6, %v125_v40  ;;  %v110_v42 = vpop.permute.xlu0 %109 }
  0xb2   :  { %v108_v41 = vpop.permute.xlu1 %107 }
  0xb3   :  { %v113_v43 = vsel %vm111_vm9, %v108_v41, %v110_v42 }
  0xb4   :  { %352 = vmatprep.subr.msk.mxu0 %vm522_vm1, %v113_v43  ;;  %364 = vmatprep.subr.msk.mxu1 %vm522_vm1, %v113_v43 }
  0xb5   :  { %v179_v45 = vpop.permute.xlu0 %178 }
  0xb6   :  { %v106_v44 = vpop.permute.xlu1 %105 }
  0xb7   :  { %v112_v46 = vsel %vm111_vm9, %v106_v44, %v108_v41 }
  0xb8   :  { %353 = vmatpush1.msk.msra.mxu0 %vm526_vm2, %v112_v46  ;;  %373 = vmatpush1.msk.msra.mxu1 %vm526_vm2, %v112_v46 }
  0xb9   :  { %v177_v48 = vpop.permute.xlu0 %176 }
  0xba   :  { %v181_v47 = vpop.permute.xlu1 %180  ;;  %v183_v50 = vsel %vm182_vm10, %v177_v48, %v179_v45 }
  0xbb   :  { %v184_v49 = vsel %vm182_vm10, %v179_v45, %v181_v47 }
  0xbc   :  { %235 = vmatprep.subr.mxu0 %v184_v49  ;;  %365 = vmatprep.subr.mxu1 %v184_v49 }
  0xbd   :  { %236 = vmatpush1.msra.mxu0 %v183_v50  ;;  %374 = vmatpush1.msra.mxu1 %v183_v50  ;;  %v97_v52 = vpop.permute.xlu0 %96 }
  0xbe   :  { %v95_v51 = vpop.permute.xlu1 %94 }
  0xbf   :  { %v100_v53 = vsel %vm98_vm11, %v95_v51, %v97_v52 }
  0xc0   :  { %354 = vmatprep.subr.msk.mxu0 %vm538_vm5, %v100_v53  ;;  %366 = vmatprep.subr.msk.mxu1 %vm538_vm5, %v100_v53 }
  0xc2   :  { %v93_v54 = vpop.permute.xlu1 %92 }
  0xc3   :  { %v99_v57 = vsel %vm98_vm11, %v93_v54, %v95_v51 }
  0xc4   :  { %355 = vmatpush1.msk.msra.mxu0 %vm542_vm6, %v99_v57  ;;  %375 = vmatpush1.msk.msra.mxu1 %vm542_vm6, %v99_v57 }
  0xc5   :  { %356 = vmatmul.mubr.msk.f32.vlgmr.msra.gmra.mxu0 %vm200_vm12, %v198_v55  ;;  %357 = vmatmul.mubr.msk.f32.vlgmr.msra.gmra.mxu1 %vm200_vm12, %v199_v56 }
 0x185   :  { %v273_v58 = vpop.f32.mrf.mxu0  ;;  %v279_v59 = vpop.f32.mrf.mxu1 }
 0x187   :  { %v275_v60 = vpop.f32.mrf.mxu0  ;;  %v281_v61 = vpop.f32.mrf.mxu1 }
 0x188   :  { %v284_v62 = vadd.f32 %v275_v60, %v273_v58  ;;  %v305_v63 = vadd.f32 %v281_v61, %v279_v59 }
 0x18a   :  { %306 = vadd.xlane.f32.xlu1 %v305_v63  ;;  %285 = vadd.xlane.f32.xlu0 %v284_v62 }
 0x213   :  { %v307_v0 = vpop.xlane.xlu1 %306  ;;  %v286_v1 = vpop.xlane.xlu0 %285 }
 0x214   :  { %v308_v2 = vmul.f32 0.00390625, %v307_v0  ;;  %v288_v3 = vmul.f32 0.00390625, %v286_v1 }
 0x216   :  { %v309_v4 = vsub.f32 %v279_v59, %v308_v2  ;;  %v310_v5 = vsub.f32 %v281_v61, %v308_v2  ;;  %v289_v6 = vsub.f32 %v273_v58, %v288_v3  ;;  %v290_v7 = vsub.f32 %v275_v60, %v288_v3 }
 0x218   :  { %v291_v8 = vmul.f32 %v289_v6, %v289_v6  ;;  %v292_v9 = vmul.f32 %v290_v7, %v290_v7  ;;  %v311_v11 = vmul.f32 %v309_v4, %v309_v4  ;;  %v312_v12 = vmul.f32 %v310_v5, %v310_v5 }
 0x21a   :  { %v293_v10 = vadd.f32 %v292_v9, %v291_v8  ;;  %v313_v13 = vadd.f32 %v312_v12, %v311_v11 }
 0x21c   :  { %294 = vadd.xlane.f32.xlu0 %v293_v10 }
 0x220   :  { %314 = vadd.xlane.f32.xlu0 %v313_v13 }
 0x2a5   :  { %v295_v14 = vpop.xlane.xlu0 %294 }
 0x2a6   :  { %v296_v15 = vmul.f32 0.00390625, %v295_v14 }
 0x2a8   :  { %v297_v16 = vadd.f32 1e-05, %v296_v15 }
 0x2a9   :  { %v315_v17 = vpop.xlane.xlu0 %314 }
 0x2aa   :  { %393 = vrsqrt.f32 %v297_v16  ;;  %v316_v18 = vmul.f32 0.00390625, %v315_v17 }
 0x2ac   :  { %v317_v19 = vadd.f32 1e-05, %v316_v18 }
 0x2ae   :  { %395 = vrsqrt.f32 %v317_v19 }
 0x2b7   :  { %v394_v20 = vpop.eup %393 }
 0x2b8   :  { %v299_v21 = vmul.f32 %v394_v20, %v289_v6  ;;  %v300_v22 = vmul.f32 %v394_v20, %v290_v7 }
 0x2ba   :  { %v301_v23 = vmax.f32 %v299_v21, 0.0  ;;  %v302_v24 = vmax.f32 %v300_v22, 0.0 }
 0x2bb   :  { %v396_v25 = vpop.eup %395 }
 0x2bc   :  { %303 = vst [vmem:[#allocation8] sm:$0xff] %v301_v23  ;;  %304 = vst [vmem:[#allocation8 + $0x8] sm:$0xff] %v302_v24  ;;  %v319_v26 = vmul.f32 %v396_v25, %v309_v4  ;;  %v320_v27 = vmul.f32 %v396_v25, %v310_v5 }
 0x2be   :  { %v321_v28 = vmax.f32 %v319_v26, 0.0  ;;  %v322_v29 = vmax.f32 %v320_v27, 0.0 }
 0x2c0   :  { %324 = vst [vmem:[#allocation8 + $0x10] sm:$0xff] %v321_v28  ;;  %325 = vst [vmem:[#allocation8 + $0x18] sm:$0xff] %v322_v29 }
 0x2c1   :  { %448 = shalt.err (!%p445_p0)
}
 0x2c2   :  { %s477_s30 = smov 256  }
 0x2c3   :  { %337 = dma.vmem_to_hbm [thread:$0]  %s332_s28, 512, %s596_s2, [#allocation5], %s477_s30, %s477_s30, %s474_s25  }
 0x2c4   :  { %461 = dma.done.wait [#allocation5], 512  }
 0x2c5   :  { %462 = vsyncadd [#allocation5], 4294966784 }
 0x2c6   :  { %341 = vsyncpa [#allocation4], 1 }
 0x2c7   :  { %342 = vsyncpa [#allocation7], 1 }
 0x2c8   :  { %343 = vsyncpa [#allocation5], 1 }

</bundles_post_ra>
